<compile_context>
chip_gen: v7x
topology: tpu7x:2x2x1
jax: 0.10.0
libtpu: 0.0.40
codegen_flags: <defaults>
</compile_context>

<pallas_src>
import functools
import math

import jax
import jax.numpy as jnp
from jax import lax
from jax.experimental import pallas as pl
from jax.experimental.pallas import tpu as pltpu


def _round_up(n, m):
    return ((n + m - 1) // m) * m


def _head_transform_kernel(x_ref, w_ref, b_ref, gamma_ref, beta_ref, o_ref,
                           acc_ref=None, *, eps, hidden, padded, nk):
    """One (tm, Hp) row tile: x @ W^T + b -> gelu(erf) -> LayerNorm.

    x_ref:               (tm, tk)  activations, native dtype (straight to MXU)
    w_ref:               (Hp, tk)  weight in PyTorch (out, in) layout
    b/gamma/beta_ref:    (1, Hp)
    o_ref:               (tm, Hp)
    acc_ref:             (tm, Hp) f32 scratch, present only when nk > 1.
    """

    def _partial_matmul():
        # Contract x's last dim with the weight's `in` dim (axis 1); f32 acc.
        return lax.dot_general(
            x_ref[...], w_ref[...],
            dimension_numbers=(((1,), (1,)), ((), ())),
            preferred_element_type=jnp.float32)

    def _epilogue(h):
        h = h + b_ref[...].astype(jnp.float32)
        # gelu (erf form): x * 0.5 * (1 + erf(x / sqrt(2)))  -- matches PyTorch
        h = h * 0.5 * (1.0 + lax.erf(h * (1.0 / math.sqrt(2.0))))

        inv_h = 1.0 / float(hidden)
        if padded:
            # Padded columns of h are exactly zero (zero weight rows, zero
            # bias, gelu(0)=0), so single-pass statistics over the full lane
            # width are exact for the real `hidden` columns -- no mask needed.
            mu = jnp.sum(h, axis=-1, keepdims=True) * inv_h
            var = jnp.sum(h * h, axis=-1, keepdims=True) * inv_h - mu * mu
            var = jnp.maximum(var, 0.0)
        else:
            mu = jnp.mean(h, axis=-1, keepdims=True)
            d = h - mu
            var = jnp.mean(d * d, axis=-1, keepdims=True)

        h = (h - mu) * lax.rsqrt(var + eps)
        h = (h * gamma_ref[...].astype(jnp.float32)
             + beta_ref[...].astype(jnp.float32))
        o_ref[...] = h.astype(o_ref.dtype)

    if nk == 1:
        # Whole weight resident in VMEM: single matmul, no accumulator pass.
        _epilogue(_partial_matmul())
    else:
        k = pl.program_id(1)

        @pl.when(k == 0)
        def _():
            acc_ref[...] = jnp.zeros_like(acc_ref)

        acc_ref[...] += _partial_matmul()

        @pl.when(k == nk - 1)
        def _():
            _epilogue(acc_ref[...])


def visual_prediction_head_transform(x, weight, bias, gamma, beta,
                                     *, eps=1e-12, tm=512):
    """x: (..., H). weight: (H, H) in PyTorch nn.Linear (out, in) layout."""
    orig_shape = x.shape
    H = orig_shape[-1]
    x2 = x.reshape(-1, H)
    M = x2.shape[0]

    in_bytes = jnp.dtype(x.dtype).itemsize
    w_bytes = jnp.dtype(weight.dtype).itemsize
    vec_bytes = (jnp.dtype(bias.dtype).itemsize
                 + jnp.dtype(gamma.dtype).itemsize
                 + jnp.dtype(beta.dtype).itemsize)

    # --- generation-aware VMEM budget ---------------------------------------
    try:
        phys_vmem = int(pltpu.get_tpu_info().vmem_capacity_bytes)
    except Exception:
        phys_vmem = 64 * 1024 * 1024                      # conservative default
    if phys_vmem >= 100 * 1024 * 1024:                     # v5e / v6e (128 MiB)
        vmem_budget = 80 * 1024 * 1024
    else:                                                  # v7x (64 MiB)
        vmem_budget = 44 * 1024 * 1024

    try:
        kind = jax.devices()[0].device_kind.lower()
    except Exception:
        kind = ""
    two_tensorcores = "7" in kind                          # v7x: 2 TCs / chip

    # --- lane-pad hidden dim only when needed --------------------------------
    Hp = 128 * pl.cdiv(H, 128)
    padded_h = Hp != H
    # TODO(synk): in a real model, hoist the weight pad so it runs once per
    # weight, not once per forward call.
    if padded_h:
        x2 = jnp.pad(x2, ((0, 0), (0, Hp - H)))
        w2 = jnp.pad(weight, ((0, Hp - H), (0, Hp - H)))   # keep (out, in) layout
        b2 = jnp.pad(bias, (0, Hp - H)).reshape(1, Hp)
        g2 = jnp.pad(gamma, (0, Hp - H)).reshape(1, Hp)
        be2 = jnp.pad(beta, (0, Hp - H)).reshape(1, Hp)
    else:
        w2 = weight
        b2 = bias.reshape(1, Hp)
        g2 = gamma.reshape(1, Hp)
        be2 = beta.reshape(1, Hp)

    # --- K tiling decision ----------------------------------------------------
    # Keep the whole weight resident when it uses at most ~1/4 of the budget;
    # otherwise tile the contraction dim (shrinking tm cannot help there).
    w_full_bytes = Hp * Hp * w_bytes
    if w_full_bytes <= vmem_budget // 4:
        tk, nk = Hp, 1
    else:
        tk_max = max(128, (vmem_budget // 4) // (2 * Hp * w_bytes))
        n128 = Hp // 128
        d = 1
        for cand in range(n128, 0, -1):                    # largest divisor fitting
            if n128 % cand == 0 and 128 * cand <= tk_max:
                d = cand
                break
        tk = 128 * d
        nk = Hp // tk

    # --- VMEM estimate & row-tile selection ----------------------------------
    def _vmem_estimate(t):
        w = (1 if nk == 1 else 2) * Hp * tk * w_bytes      # weight buffers
        x_io = 2 * t * tk * in_bytes                       # x tile (double-buf)
        o_io = 2 * t * Hp * in_bytes                       # out tile (double-buf)
        acc = t * Hp * 4 if nk > 1 else 0                  # accumulator scratch
        h_tmp = t * Hp * 4                                 # f32 epilogue temp
        vecs = Hp * vec_bytes                              # bias/gamma/beta
        return w + x_io + o_io + acc + h_tmp + vecs

    tm_eff = max(8, min(tm, _round_up(M, 8)))
    # Grow the row tile to fill the budget (fewer grid steps, fuller MXU feeds).
    while (tm_eff < _round_up(M, 8) and tm_eff < 2048
           and _vmem_estimate(tm_eff * 2) <= vmem_budget):
        tm_eff *= 2
    # On 2-TensorCore parts make sure both cores get work for small M.
    if (two_tensorcores and _round_up(M, tm_eff) // tm_eff < 2 and tm_eff > 8):
        tm_eff = max(8, _round_up((M + 1) // 2, 8))
    while _vmem_estimate(tm_eff) > vmem_budget and tm_eff > 8:
        tm_eff = max(8, _round_up(tm_eff // 2, 8))

    # --- pad token count to the row tile only when needed ---------------------
    Mp = _round_up(M, tm_eff)
    if Mp != M:
        x2 = jnp.pad(x2, ((0, Mp - M), (0, 0)))
    grid = (Mp // tm_eff, nk)

    kernel = functools.partial(_head_transform_kernel,
                               eps=eps, hidden=H, padded=padded_h, nk=nk)
    scratch_shapes = ([] if nk == 1
                      else [pltpu.VMEM((tm_eff, Hp), jnp.float32)])

    cost = pl.CostEstimate(
        flops=2 * Mp * Hp * Hp + 10 * Mp * Hp,
        transcendentals=Mp * Hp + Mp,
        bytes_accessed=(Mp * Hp * in_bytes * 2                       # x in + out
                        + (Mp // tm_eff if nk > 1 else 1) * Hp * Hp * w_bytes
                        + Hp * vec_bytes))

    def _specs(single_buffer_consts):
        def bs(shape, imap, const):
            if const and single_buffer_consts:
                return pl.BlockSpec(shape, imap, pipeline_mode=pl.Buffered(1))
            return pl.BlockSpec(shape, imap)
        in_specs = [
            bs((tm_eff, tk), lambda i, k: (i, k), False),   # x tile
            bs((Hp, tk), lambda i, k: (0, k), nk == 1),     # weight
            bs((1, Hp), lambda i, k: (0, 0), True),         # bias
            bs((1, Hp), lambda i, k: (0, 0), True),         # LN gamma
            bs((1, Hp), lambda i, k: (0, 0), True),         # LN beta
        ]
        out_specs = pl.BlockSpec((tm_eff, Hp), lambda i, k: (i, 0))
        return in_specs, out_specs

    def _call(single_buffer_consts):
        in_specs, out_specs = _specs(single_buffer_consts)
        return pl.pallas_call(
            kernel,
            out_shape=jax.ShapeDtypeStruct((Mp, Hp), x.dtype),
            grid_spec=pltpu.PrefetchScalarGridSpec(
                num_scalar_prefetch=0,
                grid=grid,
                in_specs=in_specs,
                out_specs=out_specs,
                scratch_shapes=scratch_shapes),
            compiler_params=pltpu.CompilerParams(
                dimension_semantics=("parallel", "arbitrary"),
                vmem_limit_bytes=int(vmem_budget)),
            cost_estimate=cost,
        )(x2, w2, b2, g2, be2)

    try:
        out = _call(True)
    except Exception:
        # pipeline_mode=pl.Buffered(1) unsupported on this build: fall back to
        # default double-buffering (costs VMEM, not correctness).
        out = _call(False)

    out = out[:M, :H]
    return out.reshape(orig_shape)


def _reference(x, weight, bias, gamma, beta, eps=1e-12):
    h = jnp.einsum("...i,oi->...o", x, weight) + bias
    h = h * 0.5 * (1.0 + lax.erf(h / jnp.sqrt(2.0)))
    mu = jnp.mean(h, axis=-1, keepdims=True)
    var = jnp.mean(jnp.square(h - mu), axis=-1, keepdims=True)
    return (h - mu) * lax.rsqrt(var + eps) * gamma + beta


if __name__ == "__main__":
    key = jax.random.PRNGKey(0)
    k_x, k_w, k_b, k_g, k_be = jax.random.split(key, 5)

    batch, seq, hidden = 2, 8, 32     # hidden_size = 32
    eps = 1e-12

    x = jax.random.normal(k_x, (batch, seq, hidden), dtype=jnp.float32)
    # nn.Linear weight (out, in); deterministic init
    weight = jax.random.normal(k_w, (hidden, hidden), dtype=jnp.float32) * 0.02
    bias = jax.random.normal(k_b, (hidden,), dtype=jnp.float32) * 0.01
    gamma = 1.0 + 0.1 * jax.random.normal(k_g, (hidden,), dtype=jnp.float32)
    beta = 0.1 * jax.random.normal(k_be, (hidden,), dtype=jnp.float32)

    out = visual_prediction_head_transform(x, weight, bias, gamma, beta,
                                           eps=eps)
    out = jax.block_until_ready(out)

    ref = _reference(x, weight, bias, gamma, beta, eps=eps)
    assert out.shape == (batch, seq, hidden)
    assert jnp.allclose(out, ref, atol=1e-5, rtol=1e-5), "mismatch vs reference"

    print("KERNEL_OK")
</pallas_src>

<mosaic_0001>
module attributes {stable_mosaic.version = 11 : i64} {
  func.func @_head_transform_kernel(%arg0: i32, %arg1: i32, %arg2: memref<16x128xf32, #tpu.memory_space<vmem>>, %arg3: memref<128x128xf32, #tpu.memory_space<vmem>>, %arg4: memref<1x128xf32, #tpu.memory_space<vmem>>, %arg5: memref<1x128xf32, #tpu.memory_space<vmem>>, %arg6: memref<1x128xf32, #tpu.memory_space<vmem>>, %arg7: memref<16x128xf32, #tpu.memory_space<vmem>>) attributes {dimension_semantics = [#tpu.dimension_semantics<parallel>, #tpu.dimension_semantics<arbitrary>], iteration_bounds = array<i64: 1, 1>, scalar_prefetch = 0 : i64, scratch_operands = 0 : i64, tpu.core_type = #tpu.core_type<tc>, window_params = [{transform_indices = @transform_0, window_bounds = array<i64: 16, 128>}, {pipeline_mode = #tpu.pipeline_mode<synchronous>, transform_indices = @transform_1, window_bounds = array<i64: 128, 128>}, {pipeline_mode = #tpu.pipeline_mode<synchronous>, transform_indices = @transform_2, window_bounds = array<i64: 1, 128>}, {pipeline_mode = #tpu.pipeline_mode<synchronous>, transform_indices = @transform_3, window_bounds = array<i64: 1, 128>}, {pipeline_mode = #tpu.pipeline_mode<synchronous>, transform_indices = @transform_4, window_bounds = array<i64: 1, 128>}, {transform_indices = @transform_5, window_bounds = array<i64: 16, 128>}]} {
    %c0 = arith.constant 0 : index
    %c0_0 = arith.constant 0 : index
    %0 = vector.load %arg2[%c0, %c0_0] : memref<16x128xf32, #tpu.memory_space<vmem>>, vector<16x128xf32>
    %c0_1 = arith.constant 0 : index
    %c0_2 = arith.constant 0 : index
    %1 = vector.load %arg3[%c0_1, %c0_2] : memref<128x128xf32, #tpu.memory_space<vmem>>, vector<128x128xf32>
    %cst = arith.constant dense<0.000000e+00> : vector<16x128xf32>
    %2 = tpu.matmul %0, %1, %cst {dimension_numbers = #tpu.dot_dimension_numbers<[1], [1], [0], [0], [0, 0, 1, 0], [], []>} : vector<16x128xf32>, vector<128x128xf32>, vector<16x128xf32> -> vector<16x128xf32>
    %c0_3 = arith.constant 0 : index
    %c0_4 = arith.constant 0 : index
    %3 = vector.load %arg4[%c0_3, %c0_4] : memref<1x128xf32, #tpu.memory_space<vmem>>, vector<1x128xf32>
    %4 = vector.broadcast %3 : vector<1x128xf32> to vector<16x128xf32>
    %5 = arith.addf %2, %4 : vector<16x128xf32>
    %cst_5 = arith.constant 5.000000e-01 : f32
    %6 = vector.broadcast %cst_5 : f32 to vector<16x128xf32>
    %7 = arith.mulf %5, %6 : vector<16x128xf32>
    %cst_6 = arith.constant 0.707106769 : f32
    %8 = vector.broadcast %cst_6 : f32 to vector<16x128xf32>
    %9 = arith.mulf %5, %8 : vector<16x128xf32>
    %10 = math.erf %9 : vector<16x128xf32>
    %cst_7 = arith.constant 1.000000e+00 : f32
    %11 = vector.broadcast %cst_7 : f32 to vector<16x128xf32>
    %12 = arith.addf %11, %10 : vector<16x128xf32>
    %13 = arith.mulf %7, %12 : vector<16x128xf32>
    %cst_8 = arith.constant dense<0.000000e+00> : vector<16xf32>
    %14 = vector.multi_reduction <add>, %13, %cst_8 [1] : vector<16x128xf32> to vector<16xf32>
    %15 = vector.shape_cast %14 : vector<16xf32> to vector<16x1xf32>
    %cst_9 = arith.constant 3.125000e-02 : f32
    %16 = vector.broadcast %cst_9 : f32 to vector<16x1xf32>
    %17 = arith.mulf %15, %16 : vector<16x1xf32>
    %18 = arith.mulf %13, %13 : vector<16x128xf32>
    %cst_10 = arith.constant dense<0.000000e+00> : vector<16xf32>
    %19 = vector.multi_reduction <add>, %18, %cst_10 [1] : vector<16x128xf32> to vector<16xf32>
    %20 = vector.shape_cast %19 : vector<16xf32> to vector<16x1xf32>
    %cst_11 = arith.constant 3.125000e-02 : f32
    %21 = vector.broadcast %cst_11 : f32 to vector<16x1xf32>
    %22 = arith.mulf %20, %21 : vector<16x1xf32>
    %23 = arith.mulf %17, %17 : vector<16x1xf32>
    %24 = arith.subf %22, %23 : vector<16x1xf32>
    %cst_12 = arith.constant 0.000000e+00 : f32
    %25 = vector.broadcast %cst_12 : f32 to vector<16x1xf32>
    %26 = arith.maximumf %24, %25 : vector<16x1xf32>
    %27 = vector.broadcast %17 : vector<16x1xf32> to vector<16x128xf32>
    %28 = arith.subf %13, %27 : vector<16x128xf32>
    %cst_13 = arith.constant 9.99999996E-13 : f32
    %29 = vector.broadcast %cst_13 : f32 to vector<16x1xf32>
    %30 = arith.addf %26, %29 : vector<16x1xf32>
    %31 = math.rsqrt %30 : vector<16x1xf32>
    %32 = vector.broadcast %31 : vector<16x1xf32> to vector<16x128xf32>
    %33 = arith.mulf %28, %32 : vector<16x128xf32>
    %c0_14 = arith.constant 0 : index
    %c0_15 = arith.constant 0 : index
    %34 = vector.load %arg5[%c0_14, %c0_15] : memref<1x128xf32, #tpu.memory_space<vmem>>, vector<1x128xf32>
    %35 = vector.broadcast %34 : vector<1x128xf32> to vector<16x128xf32>
    %36 = arith.mulf %33, %35 : vector<16x128xf32>
    %c0_16 = arith.constant 0 : index
    %c0_17 = arith.constant 0 : index
    %37 = vector.load %arg6[%c0_16, %c0_17] : memref<1x128xf32, #tpu.memory_space<vmem>>, vector<1x128xf32>
    %38 = vector.broadcast %37 : vector<1x128xf32> to vector<16x128xf32>
    %39 = arith.addf %36, %38 : vector<16x128xf32>
    %c0_18 = arith.constant 0 : index
    %c0_19 = arith.constant 0 : index
    %40 = vector.load %arg7[%c0_18, %c0_19] : memref<16x128xf32, #tpu.memory_space<vmem>>, vector<16x128xf32>
    tpu.vector_store %arg7[%c0_18, %c0_19], %39 {strides = array<i32>} : memref<16x128xf32, #tpu.memory_space<vmem>>, vector<16x128xf32>,
    return
  }
  func.func @transform_0(%arg0: i32, %arg1: i32) -> (i32, i32) {
    %c0_i32 = arith.constant 0 : i32
    return %arg0, %arg1 : i32, i32
  }
  func.func @transform_1(%arg0: i32, %arg1: i32) -> (i32, i32) {
    %c0_i32 = arith.constant 0 : i32
    %c0_i32_0 = arith.constant 0 : i32
    return %c0_i32, %arg1 : i32, i32
  }
  func.func @transform_2(%arg0: i32, %arg1: i32) -> (i32, i32) {
    %c0_i32 = arith.constant 0 : i32
    %c0_i32_0 = arith.constant 0 : i32
    %c0_i32_1 = arith.constant 0 : i32
    return %c0_i32, %c0_i32_0 : i32, i32
  }
  func.func @transform_3(%arg0: i32, %arg1: i32) -> (i32, i32) {
    %c0_i32 = arith.constant 0 : i32
    %c0_i32_0 = arith.constant 0 : i32
    %c0_i32_1 = arith.constant 0 : i32
    return %c0_i32, %c0_i32_0 : i32, i32
  }
  func.func @transform_4(%arg0: i32, %arg1: i32) -> (i32, i32) {
    %c0_i32 = arith.constant 0 : i32
    %c0_i32_0 = arith.constant 0 : i32
    %c0_i32_1 = arith.constant 0 : i32
    return %c0_i32, %c0_i32_0 : i32, i32
  }
  func.func @transform_5(%arg0: i32, %arg1: i32) -> (i32, i32) {
    %c0_i32 = arith.constant 0 : i32
    %c0_i32_0 = arith.constant 0 : i32
    return %arg0, %c0_i32 : i32, i32
  }
}

module attributes {stable_mosaic.version = 11 : i64} {
  func.func @_head_transform_kernel(%arg0: i32, %arg1: i32, %arg2: memref<16x128xf32, #tpu.memory_space<vmem>>, %arg3: memref<128x128xf32, #tpu.memory_space<vmem>>, %arg4: memref<1x128xf32, #tpu.memory_space<vmem>>, %arg5: memref<1x128xf32, #tpu.memory_space<vmem>>, %arg6: memref<1x128xf32, #tpu.memory_space<vmem>>, %arg7: memref<16x128xf32, #tpu.memory_space<vmem>>) attributes {dimension_semantics = [#tpu.dimension_semantics<parallel>, #tpu.dimension_semantics<arbitrary>], iteration_bounds = array<i64: 1, 1>, scalar_prefetch = 0 : i64, scratch_operands = 0 : i64, tpu.core_type = #tpu.core_type<tc>, window_params = [{transform_indices = @transform_0, window_bounds = array<i64: 16, 128>}, {transform_indices = @transform_1, window_bounds = array<i64: 128, 128>}, {pipeline_mode = #tpu.pipeline_mode<synchronous>, transform_indices = @transform_2, window_bounds = array<i64: 1, 128>}, {pipeline_mode = #tpu.pipeline_mode<synchronous>, transform_indices = @transform_3, window_bounds = array<i64: 1, 128>}, {pipeline_mode = #tpu.pipeline_mode<synchronous>, transform_indices = @transform_4, window_bounds = array<i64: 1, 128>}, {transform_indices = @transform_5, window_bounds = array<i64: 16, 128>}]} {
    %c0 = arith.constant 0 : index
    %c0_0 = arith.constant 0 : index
    %0 = vector.load %arg2[%c0, %c0_0] : memref<16x128xf32, #tpu.memory_space<vmem>>, vector<16x128xf32>
    %c0_1 = arith.constant 0 : index
    %c0_2 = arith.constant 0 : index
    %1 = vector.load %arg3[%c0_1, %c0_2] : memref<128x128xf32, #tpu.memory_space<vmem>>, vector<128x128xf32>
    %cst = arith.constant dense<0.000000e+00> : vector<16x128xf32>
    %2 = tpu.matmul %0, %1, %cst {dimension_numbers = #tpu.dot_dimension_numbers<[1], [1], [0], [0], [0, 0, 1, 0], [], []>} : vector<16x128xf32>, vector<128x128xf32>, vector<16x128xf32> -> vector<16x128xf32>
    %c0_3 = arith.constant 0 : index
    %c0_4 = arith.constant 0 : index
    %3 = vector.load %arg4[%c0_3, %c0_4] : memref<1x128xf32, #tpu.memory_space<vmem>>, vector<1x128xf32>
    %4 = vector.broadcast %3 : vector<1x128xf32> to vector<16x128xf32>
    %5 = arith.addf %2, %4 : vector<16x128xf32>
    %cst_5 = arith.constant 5.000000e-01 : f32
    %6 = vector.broadcast %cst_5 : f32 to vector<16x128xf32>
    %7 = arith.mulf %5, %6 : vector<16x128xf32>
    %cst_6 = arith.constant 0.707106769 : f32
    %8 = vector.broadcast %cst_6 : f32 to vector<16x128xf32>
    %9 = arith.mulf %5, %8 : vector<16x128xf32>
    %10 = math.erf %9 : vector<16x128xf32>
    %cst_7 = arith.constant 1.000000e+00 : f32
    %11 = vector.broadcast %cst_7 : f32 to vector<16x128xf32>
    %12 = arith.addf %11, %10 : vector<16x128xf32>
    %13 = arith.mulf %7, %12 : vector<16x128xf32>
    %cst_8 = arith.constant dense<0.000000e+00> : vector<16xf32>
    %14 = vector.multi_reduction <add>, %13, %cst_8 [1] : vector<16x128xf32> to vector<16xf32>
    %15 = vector.shape_cast %14 : vector<16xf32> to vector<16x1xf32>
    %cst_9 = arith.constant 3.125000e-02 : f32
    %16 = vector.broadcast %cst_9 : f32 to vector<16x1xf32>
    %17 = arith.mulf %15, %16 : vector<16x1xf32>
    %18 = arith.mulf %13, %13 : vector<16x128xf32>
    %cst_10 = arith.constant dense<0.000000e+00> : vector<16xf32>
    %19 = vector.multi_reduction <add>, %18, %cst_10 [1] : vector<16x128xf32> to vector<16xf32>
    %20 = vector.shape_cast %19 : vector<16xf32> to vector<16x1xf32>
    %cst_11 = arith.constant 3.125000e-02 : f32
    %21 = vector.broadcast %cst_11 : f32 to vector<16x1xf32>
    %22 = arith.mulf %20, %21 : vector<16x1xf32>
    %23 = arith.mulf %17, %17 : vector<16x1xf32>
    %24 = arith.subf %22, %23 : vector<16x1xf32>
    %cst_12 = arith.constant 0.000000e+00 : f32
    %25 = vector.broadcast %cst_12 : f32 to vector<16x1xf32>
    %26 = arith.maximumf %24, %25 : vector<16x1xf32>
    %27 = vector.broadcast %17 : vector<16x1xf32> to vector<16x128xf32>
    %28 = arith.subf %13, %27 : vector<16x128xf32>
    %cst_13 = arith.constant 9.99999996E-13 : f32
    %29 = vector.broadcast %cst_13 : f32 to vector<16x1xf32>
    %30 = arith.addf %26, %29 : vector<16x1xf32>
    %31 = math.rsqrt %30 : vector<16x1xf32>
    %32 = vector.broadcast %31 : vector<16x1xf32> to vector<16x128xf32>
    %33 = arith.mulf %28, %32 : vector<16x128xf32>
    %c0_14 = arith.constant 0 : index
    %c0_15 = arith.constant 0 : index
    %34 = vector.load %arg5[%c0_14, %c0_15] : memref<1x128xf32, #tpu.memory_space<vmem>>, vector<1x128xf32>
    %35 = vector.broadcast %34 : vector<1x128xf32> to vector<16x128xf32>
    %36 = arith.mulf %33, %35 : vector<16x128xf32>
    %c0_16 = arith.constant 0 : index
    %c0_17 = arith.constant 0 : index
    %37 = vector.load %arg6[%c0_16, %c0_17] : memref<1x128xf32, #tpu.memory_space<vmem>>, vector<1x128xf32>
    %38 = vector.broadcast %37 : vector<1x128xf32> to vector<16x128xf32>
    %39 = arith.addf %36, %38 : vector<16x128xf32>
    %c0_18 = arith.constant 0 : index
    %c0_19 = arith.constant 0 : index
    %40 = vector.load %arg7[%c0_18, %c0_19] : memref<16x128xf32, #tpu.memory_space<vmem>>, vector<16x128xf32>
    tpu.vector_store %arg7[%c0_18, %c0_19], %39 {strides = array<i32>} : memref<16x128xf32, #tpu.memory_space<vmem>>, vector<16x128xf32>,
    return
  }
  func.func @transform_0(%arg0: i32, %arg1: i32) -> (i32, i32) {
    %c0_i32 = arith.constant 0 : i32
    return %arg0, %arg1 : i32, i32
  }
  func.func @transform_1(%arg0: i32, %arg1: i32) -> (i32, i32) {
    %c0_i32 = arith.constant 0 : i32
    %c0_i32_0 = arith.constant 0 : i32
    return %c0_i32, %arg1 : i32, i32
  }
  func.func @transform_2(%arg0: i32, %arg1: i32) -> (i32, i32) {
    %c0_i32 = arith.constant 0 : i32
    %c0_i32_0 = arith.constant 0 : i32
    %c0_i32_1 = arith.constant 0 : i32
    return %c0_i32, %c0_i32_0 : i32, i32
  }
  func.func @transform_3(%arg0: i32, %arg1: i32) -> (i32, i32) {
    %c0_i32 = arith.constant 0 : i32
    %c0_i32_0 = arith.constant 0 : i32
    %c0_i32_1 = arith.constant 0 : i32
    return %c0_i32, %c0_i32_0 : i32, i32
  }
  func.func @transform_4(%arg0: i32, %arg1: i32) -> (i32, i32) {
    %c0_i32 = arith.constant 0 : i32
    %c0_i32_0 = arith.constant 0 : i32
    %c0_i32_1 = arith.constant 0 : i32
    return %c0_i32, %c0_i32_0 : i32, i32
  }
  func.func @transform_5(%arg0: i32, %arg1: i32) -> (i32, i32) {
    %c0_i32 = arith.constant 0 : i32
    %c0_i32_0 = arith.constant 0 : i32
    return %arg0, %c0_i32 : i32, i32
  }
}

</mosaic_0001>

<bundles_post_ra>
// kernel: tpu_custom_call.1
= control target key start
LH: loop header
LB: loop body
LE: loop exit
PB: predicated region body
PF: predicated region fallthrough
CT: control target
= control target key end

     0   :  { %10 = vsyncpa [#allocation3], 0  ;;  %s487_s0 = inlined_call_operand.hbm [shape: f32[16,128], index: 0, kind: input, shape index: {}]   ;;  %s488_s1 = inlined_call_operand.hbm [shape: f32[128,128], index: 1, kind: input, shape index: {}]   ;;  %s489_s2 = inlined_call_operand.vmem [shape: f32[1,128], index: 2, kind: input, shape index: {}]   ;;  %s490_s3 = inlined_call_operand.vmem [shape: f32[1,128], index: 3, kind: input, shape index: {}]   ;;  %s491_s4 = inlined_call_operand.vmem [shape: f32[1,128], index: 4, kind: input, shape index: {}]   ;;  %s492_s5 = inlined_call_operand.hbm [shape: f32[16,128], index: 5, kind: output, shape index: {}]  }
   0x1   :  { %11 = vsyncpa [#allocation6], 0 }
   0x2   :  { %12 = vsyncpa [#allocation4], 0  ;;  %s398_s18 = smov [#allocation2]   ;;  %s326_s22 = scalar_lea.hbm %s487_s0, 256 }
   0x3   :  { %s18_s19 = sshll.u32 %s398_s18, 4  ;;  %p327_p0 = scmp.ne.s32.totalorder %s487_s0, %s326_s22  ;;  %s19_s19 = int_to_ptr.vmem [resolvable:$true] %s18_s19 }
   0x4   :  { %p330_p1 = scmp.lt.u32.totalorder %s326_s22, %s487_s0 }
   0x6   :  { %p332_p2 = pnand %p330_p1, %p327_p0 }
   0x8   :  { %335 = shalt.err (!%p332_p2)
}
   0x9   :  { %s336_s27 = scalar_lea.vmem %s19_s19, 256  ;;  %p341_p4 = scmp.lt.s32.totalorder %s19_s19, %s19_s19 }
   0xa   :  { %p337_p3 = scmp.ne.s32.totalorder %s19_s19, %s336_s27  ;;  %p342_p5 = scmp.lt.s32.totalorder %s336_s27, %s336_s27 }
   0xc   :  { %p343_p6 = por %p342_p5, %p341_p4 }
   0xe   :  { %p344_p7 = pnand %p343_p6, %p337_p3 }
  0x10   :  { %347 = shalt.err (!%p344_p7)
}
  0x11   :  { %s399_s28 = smov 128   ;;  %s400_s29 = smov 8  }
  0x12   :  { %24 = dma.hbm_to_vmem [thread:$0]  %s487_s0, 256, %s19_s19, [#allocation3], %s399_s28, %s399_s28, %s400_s29  }
  0x13   :  { %s401_s7 = smov [#allocation5]   ;;  %s348_s11 = scalar_lea.hbm %s488_s1, 2048 }
  0x14   :  { %s30_s8 = sshll.u32 %s401_s7, 4  ;;  %p349_p8 = scmp.ne.s32.totalorder %s488_s1, %s348_s11  ;;  %s31_s8 = int_to_ptr.vmem [resolvable:$true] %s30_s8 }
  0x15   :  { %p352_p9 = scmp.lt.u32.totalorder %s348_s11, %s488_s1 }
  0x17   :  { %p354_p10 = pnand %p352_p9, %p349_p8 }
  0x19   :  { %357 = shalt.err (!%p354_p10)
}
  0x1a   :  { %s358_s16 = scalar_lea.vmem %s31_s8, 2048  ;;  %p363_p12 = scmp.lt.s32.totalorder %s31_s8, %s31_s8 }
  0x1b   :  { %p359_p11 = scmp.ne.s32.totalorder %s31_s8, %s358_s16  ;;  %p364_p13 = scmp.lt.s32.totalorder %s358_s16, %s358_s16 }
  0x1d   :  { %p365_p0 = por %p364_p13, %p363_p12 }
  0x1f   :  { %p366_p1 = pnand %p365_p0, %p359_p11 }
  0x21   :  { %369 = shalt.err (!%p366_p1)
}
  0x22   :  { %36 = dma.hbm_to_vmem [thread:$0]  %s488_s1, 2048, %s31_s8, [#allocation6], %s399_s28, %s399_s28, %s400_s29  }
  0x23   :  { %392 = dma.done.wait [#allocation3], 256  }
  0x24   :  { %393 = vsyncadd [#allocation3], 4294967040 }
  0x25   :  { %394 = dma.done.wait [#allocation6], 2048  }
  0x26   :  { %395 = vsyncadd [#allocation6], 4294965248  ;;  %v51_v0 = vld [vmem:[#allocation5] sm:$0xff]  ;;  %v52_v1 = vld [vmem:[#allocation5 + $0x8] sm:$0xff]  ;;  %s402_s22 = smov [#allocation7]  }
  0x27   :  { %v53_v2 = vld [vmem:[#allocation5 + $0x10] sm:$0xff]  ;;  %v281_v3 = vpack.c.bf16 %v52_v1, %v51_v0  ;;  %v54_v4 = vld [vmem:[#allocation5 + $0x18] sm:$0xff]  ;;  %v55_v7 = vld [vmem:[#allocation5 + $0x20] sm:$0xff]  ;;  %s212_s23 = sshll.u32 %s402_s22, 4  ;;  %s213_s23 = int_to_ptr.vmem [resolvable:$true] %s212_s23 }
  0x28   :  { %v285_v5 = vpack.c.bf16 %v54_v4, %v53_v2  ;;  %v49_v6 = vld [vmem:[#allocation2] sm:$0xff]  ;;  %v56_v8 = vld [vmem:[#allocation5 + $0x28] sm:$0xff]  ;;  %v58_v11 = vld [vmem:[#allocation5 + $0x38] sm:$0xff]  ;;  %s370_s24 = scalar_lea.vmem %s213_s23, 256  ;;  %p375_p3 = scmp.lt.s32.totalorder %s213_s23, %s213_s23 }
  0x29   :  { %282 = vmatprep.subr.bf16.mxu0 %v281_v3  ;;  %278 = vmatprep.mubr.f32.mxu0 %v49_v6  ;;  %v289_v9 = vpack.c.bf16 %v56_v8, %v55_v7  ;;  %v57_v10 = vld [vmem:[#allocation5 + $0x30] sm:$0xff]  ;;  %v59_v13 = vld [vmem:[#allocation5 + $0x40] sm:$0xff]  ;;  %v60_v14 = vld [vmem:[#allocation5 + $0x48] sm:$0xff]  ;;  %p371_p2 = scmp.ne.s32.totalorder %s213_s23, %s370_s24  ;;  %p376_p4 = scmp.lt.s32.totalorder %s370_s24, %s370_s24 }
  0x2a   :  { %284 = vmatpush3.bf16.xpose.msra.mxu0 %v281_v3  ;;  %v293_v12 = vpack.c.bf16 %v58_v11, %v57_v10  ;;  %v297_v15 = vpack.c.bf16 %v60_v14, %v59_v13  ;;  %v61_v16 = vld [vmem:[#allocation5 + $0x50] sm:$0xff]  ;;  %v62_v17 = vld [vmem:[#allocation5 + $0x58] sm:$0xff]  ;;  %v63_v19 = vld [vmem:[#allocation5 + $0x60] sm:$0xff] }
  0x2b   :  { %286 = vmatprep.subr.bf16.mxu0 %v285_v5  ;;  %v301_v18 = vpack.c.bf16 %v62_v17, %v61_v16  ;;  %v64_v20 = vld [vmem:[#allocation5 + $0x68] sm:$0xff]  ;;  %v65_v22 = vld [vmem:[#allocation5 + $0x70] sm:$0xff]  ;;  %v66_v23 = vld [vmem:[#allocation5 + $0x78] sm:$0xff]  ;;  %p377_p5 = por %p376_p4, %p375_p3 }
  0x2c   :  { %v305_v21 = vpack.c.bf16 %v64_v20, %v63_v19  ;;  %v309_v24 = vpack.c.bf16 %v66_v23, %v65_v22  ;;  %v50_v25 = vld [vmem:[#allocation2 + $0x8] sm:$0xff]  ;;  %v225_v26 = vld [vmem:[%s489_s2] ss:$0 sm:$0xff] }
  0x2d   :  { %v226_v61 = vld [vmem:[%s490_s3] ss:$0 sm:$0xff]  ;;  %p378_p6 = pnand %p377_p5, %p371_p2 }
  0x2e   :  { %v227_v63 = vld [vmem:[%s491_s4] ss:$0 sm:$0xff] }
  0x32   :  { %288 = vmatpush3.bf16.xpose.msra.mxu0 %v285_v5 }
  0x33   :  { %290 = vmatprep.subr.bf16.mxu0 %v289_v9 }
  0x3a   :  { %292 = vmatpush3.bf16.xpose.msra.mxu0 %v289_v9 }
  0x3b   :  { %294 = vmatprep.subr.bf16.mxu0 %v293_v12 }
  0x42   :  { %296 = vmatpush3.bf16.xpose.msra.mxu0 %v293_v12 }
  0x43   :  { %298 = vmatprep.subr.bf16.mxu0 %v297_v15 }
  0x4a   :  { %300 = vmatpush3.bf16.xpose.msra.mxu0 %v297_v15 }
  0x4b   :  { %302 = vmatprep.subr.bf16.mxu0 %v301_v18 }
  0x52   :  { %304 = vmatpush3.bf16.xpose.msra.mxu0 %v301_v18 }
  0x53   :  { %306 = vmatprep.subr.bf16.mxu0 %v305_v21 }
  0x5a   :  { %308 = vmatpush3.bf16.xpose.msra.mxu0 %v305_v21 }
  0x5b   :  { %310 = vmatprep.subr.bf16.mxu0 %v309_v24 }
  0x62   :  { %312 = vmatpush3.bf16.xpose.msra.mxu0 %v309_v24 }
  0x69   :  { %279 = vmatmul.mubr.f32.vlgmr.msra.gmra.mrb[0].mxu0 %v50_v25 }
 0x13c   :  { %v280_v27 = vpop.f32.mrb[0].mxu0 }
 0x13d   :  { %v146_v28 = vadd.f32 %v280_v27, %v225_v26  ;;  %v140_v29 = vpop.f32.mrb[1].mxu0 }
 0x13e   :  { %v141_v30 = vadd.f32 %v225_v26, %v140_v29 }
 0x13f   :  { %v152_v31 = vmul.f32 0.70710677, %v146_v28  ;;  %v150_v38 = vmul.f32 0.5, %v146_v28 }
 0x140   :  { %v151_v32 = vmul.f32 0.70710677, %v141_v30  ;;  %v149_v36 = vmul.f32 0.5, %v141_v30 }
 0x141   :  { %318 = verf.f32 %v152_v31 }
 0x142   :  { %320 = verf.f32 %v151_v32 }
 0x14b   :  { %v319_v33 = vpop.eup %318 }
 0x14c   :  { %v321_v34 = vpop.eup %320  ;;  %v156_v35 = vadd.f32 1.0, %v319_v33 }
 0x14d   :  { %v155_v37 = vadd.f32 1.0, %v321_v34 }
 0x14e   :  { %v158_v41 = vmul.f32 %v156_v35, %v150_v38 }
 0x14f   :  { %v157_v39 = vmul.f32 %v155_v37, %v149_v36 }
 0x150   :  { %v166_v42 = vmul.f32 %v158_v41, %v158_v41 }
 0x151   :  { %159 = vadd.xlane.f32.xlu0 %v157_v39  ;;  %v165_v40 = vmul.f32 %v157_v39, %v157_v39 }
 0x153   :  { %167 = vadd.xlane.f32.xlu1 %v165_v40 }
 0x155   :  { %161 = vadd.xlane.f32.xlu0 %v158_v41 }
 0x157   :  { %169 = vadd.xlane.f32.xlu1 %v166_v42 }
 0x1de   :  { %v160_v43 = vpop.xlane.xlu0 %159 }
 0x1df   :  { %v163_v44 = vmul.f32 0.03125, %v160_v43 }
 0x1e0   :  { %v168_v45 = vpop.xlane.xlu1 %167 }
 0x1e1   :  { %v173_v46 = vmul.f32 %v163_v44, %v163_v44  ;;  %v171_v47 = vmul.f32 0.03125, %v168_v45  ;;  %v179_v59 = vsub.f32 %v157_v39, %v163_v44 }
 0x1e2   :  { %v162_v48 = vpop.xlane.xlu0 %161 }
 0x1e3   :  { %v175_v49 = vsub.f32 %v171_v47, %v173_v46  ;;  %v164_v50 = vmul.f32 0.03125, %v162_v48 }
 0x1e4   :  { %v170_v51 = vpop.xlane.xlu1 %169 }
 0x1e5   :  { %v177_v52 = vmax.f32 %v175_v49, 0.0  ;;  %v174_v53 = vmul.f32 %v164_v50, %v164_v50  ;;  %v172_v54 = vmul.f32 0.03125, %v170_v51  ;;  %v180_v0 = vsub.f32 %v158_v41, %v164_v50 }
 0x1e7   :  { %v181_v55 = vadd.f32 1e-12, %v177_v52  ;;  %v176_v56 = vsub.f32 %v172_v54, %v174_v53 }
 0x1e9   :  { %322 = vrsqrt.f32 %v181_v55  ;;  %v178_v57 = vmax.f32 %v176_v56, 0.0 }
 0x1eb   :  { %v182_v58 = vadd.f32 1e-12, %v178_v57 }
 0x1ed   :  { %324 = vrsqrt.f32 %v182_v58 }
 0x1f3   :  { %v323_v60 = vpop.eup %322 }
 0x1f4   :  { %v185_v62 = vmul.f32 %v323_v60, %v179_v59 }
 0x1f6   :  { %v194_v1 = vmul.f32 %v226_v61, %v185_v62 }
 0x1f7   :  { %v325_v2 = vpop.eup %324 }
 0x1f8   :  { %v186_v3 = vmul.f32 %v325_v2, %v180_v0  ;;  %v203_v4 = vadd.f32 %v227_v63, %v194_v1 }
 0x1fa   :  { %v195_v5 = vmul.f32 %v226_v61, %v186_v3  ;;  %205 = vst [vmem:[#allocation7] sm:$0xff] %v203_v4 }
 0x1fc   :  { %v204_v6 = vadd.f32 %v227_v63, %v195_v5 }
 0x1fe   :  { %206 = vst [vmem:[#allocation7 + $0x8] sm:$0xff] %v204_v6 }
 0x1ff   :  { %381 = shalt.err (!%p378_p6)
}
 0x200   :  { %s382_s25 = scalar_lea.hbm %s492_s5, 256 }
 0x201   :  { %p383_p7 = scmp.ne.s32.totalorder %s492_s5, %s382_s25  ;;  %p386_p8 = scmp.lt.u32.totalorder %s382_s25, %s492_s5 }
 0x203   :  { %p388_p9 = pnand %p386_p8, %p383_p7 }
 0x205   :  { %391 = shalt.err (!%p388_p9)
}
 0x206   :  { %218 = dma.vmem_to_hbm [thread:$0]  %s213_s23, 256, %s492_s5, [#allocation4], %s399_s28, %s399_s28, %s400_s29  }
 0x207   :  { %396 = dma.done.wait [#allocation4], 256  }
 0x208   :  { %397 = vsyncadd [#allocation4], 4294967040 }
 0x209   :  { %222 = vsyncpa [#allocation3], 1 }
 0x20a   :  { %223 = vsyncpa [#allocation6], 1 }
 0x20b   :  { %224 = vsyncpa [#allocation4], 1 }

// kernel: tpu_custom_call.1
= control target key start
LH: loop header
LB: loop body
LE: loop exit
PB: predicated region body
PF: predicated region fallthrough
CT: control target
= control target key end

     0   :  { %10 = vsyncpa [#allocation3], 0  ;;  %s487_s0 = inlined_call_operand.hbm [shape: f32[16,128], index: 0, kind: input, shape index: {}]   ;;  %s488_s1 = inlined_call_operand.hbm [shape: f32[128,128], index: 1, kind: input, shape index: {}]   ;;  %s489_s2 = inlined_call_operand.vmem [shape: f32[1,128], index: 2, kind: input, shape index: {}]   ;;  %s490_s3 = inlined_call_operand.vmem [shape: f32[1,128], index: 3, kind: input, shape index: {}]   ;;  %s491_s4 = inlined_call_operand.vmem [shape: f32[1,128], index: 4, kind: input, shape index: {}]   ;;  %s492_s5 = inlined_call_operand.hbm [shape: f32[16,128], index: 5, kind: output, shape index: {}]  }
   0x1   :  { %11 = vsyncpa [#allocation6], 0 }
   0x2   :  { %12 = vsyncpa [#allocation4], 0  ;;  %s398_s18 = smov [#allocation2]   ;;  %s326_s22 = scalar_lea.hbm %s487_s0, 256 }
   0x3   :  { %s18_s19 = sshll.u32 %s398_s18, 4  ;;  %p327_p0 = scmp.ne.s32.totalorder %s487_s0, %s326_s22  ;;  %s19_s19 = int_to_ptr.vmem [resolvable:$true] %s18_s19 }
   0x4   :  { %p330_p1 = scmp.lt.u32.totalorder %s326_s22, %s487_s0 }
   0x6   :  { %p332_p2 = pnand %p330_p1, %p327_p0 }
   0x8   :  { %335 = shalt.err (!%p332_p2)
}
   0x9   :  { %s336_s27 = scalar_lea.vmem %s19_s19, 256  ;;  %p341_p4 = scmp.lt.s32.totalorder %s19_s19, %s19_s19 }
   0xa   :  { %p337_p3 = scmp.ne.s32.totalorder %s19_s19, %s336_s27  ;;  %p342_p5 = scmp.lt.s32.totalorder %s336_s27, %s336_s27 }
   0xc   :  { %p343_p6 = por %p342_p5, %p341_p4 }
   0xe   :  { %p344_p7 = pnand %p343_p6, %p337_p3 }
  0x10   :  { %347 = shalt.err (!%p344_p7)
}
  0x11   :  { %s399_s28 = smov 128   ;;  %s400_s29 = smov 8  }
  0x12   :  { %24 = dma.hbm_to_vmem [thread:$0]  %s487_s0, 256, %s19_s19, [#allocation3], %s399_s28, %s399_s28, %s400_s29  }
  0x13   :  { %s401_s7 = smov [#allocation5]   ;;  %s348_s11 = scalar_lea.hbm %s488_s1, 2048 }
  0x14   :  { %s30_s8 = sshll.u32 %s401_s7, 4  ;;  %p349_p8 = scmp.ne.s32.totalorder %s488_s1, %s348_s11  ;;  %s31_s8 = int_to_ptr.vmem [resolvable:$true] %s30_s8 }
  0x15   :  { %p352_p9 = scmp.lt.u32.totalorder %s348_s11, %s488_s1 }
  0x17   :  { %p354_p10 = pnand %p352_p9, %p349_p8 }
  0x19   :  { %357 = shalt.err (!%p354_p10)
}
  0x1a   :  { %s358_s16 = scalar_lea.vmem %s31_s8, 2048  ;;  %p363_p12 = scmp.lt.s32.totalorder %s31_s8, %s31_s8 }
  0x1b   :  { %p359_p11 = scmp.ne.s32.totalorder %s31_s8, %s358_s16  ;;  %p364_p13 = scmp.lt.s32.totalorder %s358_s16, %s358_s16 }
  0x1d   :  { %p365_p0 = por %p364_p13, %p363_p12 }
  0x1f   :  { %p366_p1 = pnand %p365_p0, %p359_p11 }
  0x21   :  { %369 = shalt.err (!%p366_p1)
}
  0x22   :  { %36 = dma.hbm_to_vmem [thread:$0]  %s488_s1, 2048, %s31_s8, [#allocation6], %s399_s28, %s399_s28, %s400_s29  }
  0x23   :  { %392 = dma.done.wait [#allocation3], 256  }
  0x24   :  { %393 = vsyncadd [#allocation3], 4294967040 }
  0x25   :  { %394 = dma.done.wait [#allocation6], 2048  }
  0x26   :  { %395 = vsyncadd [#allocation6], 4294965248  ;;  %v51_v0 = vld [vmem:[#allocation5] sm:$0xff]  ;;  %v52_v1 = vld [vmem:[#allocation5 + $0x8] sm:$0xff]  ;;  %s402_s22 = smov [#allocation7]  }
  0x27   :  { %v53_v2 = vld [vmem:[#allocation5 + $0x10] sm:$0xff]  ;;  %v281_v3 = vpack.c.bf16 %v52_v1, %v51_v0  ;;  %v54_v4 = vld [vmem:[#allocation5 + $0x18] sm:$0xff]  ;;  %v55_v7 = vld [vmem:[#allocation5 + $0x20] sm:$0xff]  ;;  %s212_s23 = sshll.u32 %s402_s22, 4  ;;  %s213_s23 = int_to_ptr.vmem [resolvable:$true] %s212_s23 }
  0x28   :  { %v285_v5 = vpack.c.bf16 %v54_v4, %v53_v2  ;;  %v49_v6 = vld [vmem:[#allocation2] sm:$0xff]  ;;  %v56_v8 = vld [vmem:[#allocation5 + $0x28] sm:$0xff]  ;;  %v58_v11 = vld [vmem:[#allocation5 + $0x38] sm:$0xff]  ;;  %s370_s24 = scalar_lea.vmem %s213_s23, 256  ;;  %p375_p3 = scmp.lt.s32.totalorder %s213_s23, %s213_s23 }
  0x29   :  { %282 = vmatprep.subr.bf16.mxu0 %v281_v3  ;;  %278 = vmatprep.mubr.f32.mxu0 %v49_v6  ;;  %v289_v9 = vpack.c.bf16 %v56_v8, %v55_v7  ;;  %v57_v10 = vld [vmem:[#allocation5 + $0x30] sm:$0xff]  ;;  %v59_v13 = vld [vmem:[#allocation5 + $0x40] sm:$0xff]  ;;  %v60_v14 = vld [vmem:[#allocation5 + $0x48] sm:$0xff]  ;;  %p371_p2 = scmp.ne.s32.totalorder %s213_s23, %s370_s24  ;;  %p376_p4 = scmp.lt.s32.totalorder %s370_s24, %s370_s24 }
  0x2a   :  { %284 = vmatpush3.bf16.xpose.msra.mxu0 %v281_v3  ;;  %v293_v12 = vpack.c.bf16 %v58_v11, %v57_v10  ;;  %v297_v15 = vpack.c.bf16 %v60_v14, %v59_v13  ;;  %v61_v16 = vld [vmem:[#allocation5 + $0x50] sm:$0xff]  ;;  %v62_v17 = vld [vmem:[#allocation5 + $0x58] sm:$0xff]  ;;  %v63_v19 = vld [vmem:[#allocation5 + $0x60] sm:$0xff] }
  0x2b   :  { %286 = vmatprep.subr.bf16.mxu0 %v285_v5  ;;  %v301_v18 = vpack.c.bf16 %v62_v17, %v61_v16  ;;  %v64_v20 = vld [vmem:[#allocation5 + $0x68] sm:$0xff]  ;;  %v65_v22 = vld [vmem:[#allocation5 + $0x70] sm:$0xff]  ;;  %v66_v23 = vld [vmem:[#allocation5 + $0x78] sm:$0xff]  ;;  %p377_p5 = por %p376_p4, %p375_p3 }
  0x2c   :  { %v305_v21 = vpack.c.bf16 %v64_v20, %v63_v19  ;;  %v309_v24 = vpack.c.bf16 %v66_v23, %v65_v22  ;;  %v50_v25 = vld [vmem:[#allocation2 + $0x8] sm:$0xff]  ;;  %v225_v26 = vld [vmem:[%s489_s2] ss:$0 sm:$0xff] }
  0x2d   :  { %v226_v61 = vld [vmem:[%s490_s3] ss:$0 sm:$0xff]  ;;  %p378_p6 = pnand %p377_p5, %p371_p2 }
  0x2e   :  { %v227_v63 = vld [vmem:[%s491_s4] ss:$0 sm:$0xff] }
  0x32   :  { %288 = vmatpush3.bf16.xpose.msra.mxu0 %v285_v5 }
  0x33   :  { %290 = vmatprep.subr.bf16.mxu0 %v289_v9 }
  0x3a   :  { %292 = vmatpush3.bf16.xpose.msra.mxu0 %v289_v9 }
  0x3b   :  { %294 = vmatprep.subr.bf16.mxu0 %v293_v12 }
  0x42   :  { %296 = vmatpush3.bf16.xpose.msra.mxu0 %v293_v12 }
  0x43   :  { %298 = vmatprep.subr.bf16.mxu0 %v297_v15 }
  0x4a   :  { %300 = vmatpush3.bf16.xpose.msra.mxu0 %v297_v15 }
  0x4b   :  { %302 = vmatprep.subr.bf16.mxu0 %v301_v18 }
  0x52   :  { %304 = vmatpush3.bf16.xpose.msra.mxu0 %v301_v18 }
  0x53   :  { %306 = vmatprep.subr.bf16.mxu0 %v305_v21 }
  0x5a   :  { %308 = vmatpush3.bf16.xpose.msra.mxu0 %v305_v21 }
  0x5b   :  { %310 = vmatprep.subr.bf16.mxu0 %v309_v24 }
  0x62   :  { %312 = vmatpush3.bf16.xpose.msra.mxu0 %v309_v24 }
  0x69   :  { %279 = vmatmul.mubr.f32.vlgmr.msra.gmra.mrb[0].mxu0 %v50_v25 }
 0x13c   :  { %v280_v27 = vpop.f32.mrb[0].mxu0 }
 0x13d   :  { %v146_v28 = vadd.f32 %v280_v27, %v225_v26  ;;  %v140_v29 = vpop.f32.mrb[1].mxu0 }
 0x13e   :  { %v141_v30 = vadd.f32 %v225_v26, %v140_v29 }
 0x13f   :  { %v152_v31 = vmul.f32 0.70710677, %v146_v28  ;;  %v150_v38 = vmul.f32 0.5, %v146_v28 }
 0x140   :  { %v151_v32 = vmul.f32 0.70710677, %v141_v30  ;;  %v149_v36 = vmul.f32 0.5, %v141_v30 }
 0x141   :  { %318 = verf.f32 %v152_v31 }
 0x142   :  { %320 = verf.f32 %v151_v32 }
 0x14b   :  { %v319_v33 = vpop.eup %318 }
 0x14c   :  { %v321_v34 = vpop.eup %320  ;;  %v156_v35 = vadd.f32 1.0, %v319_v33 }
 0x14d   :  { %v155_v37 = vadd.f32 1.0, %v321_v34 }
 0x14e   :  { %v158_v41 = vmul.f32 %v156_v35, %v150_v38 }
 0x14f   :  { %v157_v39 = vmul.f32 %v155_v37, %v149_v36 }
 0x150   :  { %v166_v42 = vmul.f32 %v158_v41, %v158_v41 }
 0x151   :  { %159 = vadd.xlane.f32.xlu0 %v157_v39  ;;  %v165_v40 = vmul.f32 %v157_v39, %v157_v39 }
 0x153   :  { %167 = vadd.xlane.f32.xlu1 %v165_v40 }
 0x155   :  { %161 = vadd.xlane.f32.xlu0 %v158_v41 }
 0x157   :  { %169 = vadd.xlane.f32.xlu1 %v166_v42 }
 0x1de   :  { %v160_v43 = vpop.xlane.xlu0 %159 }
 0x1df   :  { %v163_v44 = vmul.f32 0.03125, %v160_v43 }
 0x1e0   :  { %v168_v45 = vpop.xlane.xlu1 %167 }
 0x1e1   :  { %v173_v46 = vmul.f32 %v163_v44, %v163_v44  ;;  %v171_v47 = vmul.f32 0.03125, %v168_v45  ;;  %v179_v59 = vsub.f32 %v157_v39, %v163_v44 }
 0x1e2   :  { %v162_v48 = vpop.xlane.xlu0 %161 }
 0x1e3   :  { %v175_v49 = vsub.f32 %v171_v47, %v173_v46  ;;  %v164_v50 = vmul.f32 0.03125, %v162_v48 }
 0x1e4   :  { %v170_v51 = vpop.xlane.xlu1 %169 }
 0x1e5   :  { %v177_v52 = vmax.f32 %v175_v49, 0.0  ;;  %v174_v53 = vmul.f32 %v164_v50, %v164_v50  ;;  %v172_v54 = vmul.f32 0.03125, %v170_v51  ;;  %v180_v0 = vsub.f32 %v158_v41, %v164_v50 }
 0x1e7   :  { %v181_v55 = vadd.f32 1e-12, %v177_v52  ;;  %v176_v56 = vsub.f32 %v172_v54, %v174_v53 }
 0x1e9   :  { %322 = vrsqrt.f32 %v181_v55  ;;  %v178_v57 = vmax.f32 %v176_v56, 0.0 }
 0x1eb   :  { %v182_v58 = vadd.f32 1e-12, %v178_v57 }
 0x1ed   :  { %324 = vrsqrt.f32 %v182_v58 }
 0x1f3   :  { %v323_v60 = vpop.eup %322 }
 0x1f4   :  { %v185_v62 = vmul.f32 %v323_v60, %v179_v59 }
 0x1f6   :  { %v194_v1 = vmul.f32 %v226_v61, %v185_v62 }
 0x1f7   :  { %v325_v2 = vpop.eup %324 }
 0x1f8   :  { %v186_v3 = vmul.f32 %v325_v2, %v180_v0  ;;  %v203_v4 = vadd.f32 %v227_v63, %v194_v1 }
 0x1fa   :  { %v195_v5 = vmul.f32 %v226_v61, %v186_v3  ;;  %205 = vst [vmem:[#allocation7] sm:$0xff] %v203_v4 }
 0x1fc   :  { %v204_v6 = vadd.f32 %v227_v63, %v195_v5 }
 0x1fe   :  { %206 = vst [vmem:[#allocation7 + $0x8] sm:$0xff] %v204_v6 }
 0x1ff   :  { %381 = shalt.err (!%p378_p6)
}
 0x200   :  { %s382_s25 = scalar_lea.hbm %s492_s5, 256 }
 0x201   :  { %p383_p7 = scmp.ne.s32.totalorder %s492_s5, %s382_s25  ;;  %p386_p8 = scmp.lt.u32.totalorder %s382_s25, %s492_s5 }
 0x203   :  { %p388_p9 = pnand %p386_p8, %p383_p7 }
 0x205   :  { %391 = shalt.err (!%p388_p9)
}
 0x206   :  { %218 = dma.vmem_to_hbm [thread:$0]  %s213_s23, 256, %s492_s5, [#allocation4], %s399_s28, %s399_s28, %s400_s29  }
 0x207   :  { %396 = dma.done.wait [#allocation4], 256  }
 0x208   :  { %397 = vsyncadd [#allocation4], 4294967040 }
 0x209   :  { %222 = vsyncpa [#allocation3], 1 }
 0x20a   :  { %223 = vsyncpa [#allocation6], 1 }
 0x20b   :  { %224 = vsyncpa [#allocation4], 1 }

</bundles_post_ra>
